<compile_context>
chip_gen: v7x
topology: tpu7x:2x2x1
jax: 0.10.0
libtpu: 0.0.40
codegen_flags: <defaults>
</compile_context>

<pallas_src>
import functools

import jax
import jax.numpy as jnp
from jax import lax
from jax.experimental import pallas as pl
from jax.experimental.pallas import tpu as pltpu


def _round_up(x, m):
    return ((x + m - 1) // m) * m


def _attention_body(v, v_query, v_key, v_value, obs_keyT, obs_value,
                    gamma, beta, out_ref, *, temperature, eps):
    """Shared tail: logits -> softmax -> value mix -> residual LayerNorm."""
    inv_t = jnp.float32(1.0 / temperature)

    # logits: self-attention (row-wise dot) and cross attention (q @ k^T, with
    # k^T precomputed in the wrapper -> plain MXU matmul, no in-kernel transpose)
    self_logit = jnp.sum(v_query * v_key, axis=-1, keepdims=True) * inv_t      # (tn, 1)
    obs_logit = jnp.dot(v_query.astype(obs_keyT.dtype), obs_keyT,
                        preferred_element_type=jnp.float32) * inv_t            # (tn, No)

    # softmax over concat([self_logit, obs_logit], -1), done without the concat
    m = jnp.maximum(jnp.max(obs_logit, axis=-1, keepdims=True), self_logit)
    e_self = jnp.exp(self_logit - m)                                           # (tn, 1)
    e_obs = jnp.exp(obs_logit - m)                                             # (tn, No)
    denom = e_self + jnp.sum(e_obs, axis=-1, keepdims=True)                    # (tn, 1)
    inv_denom = pl.reciprocal(denom, approx=True)                              # EUP slot
    w_self = e_self * inv_denom
    w_obs = e_obs * inv_denom

    # weighted mix of values + residual
    v_new = w_self * v_value + jnp.dot(w_obs.astype(obs_value.dtype), obs_value,
                                       preferred_element_type=jnp.float32)
    x = v_new + v.astype(jnp.float32)                                          # (tn, E)

    # LayerNorm(eps) with learnable affine
    mu = jnp.mean(x, axis=-1, keepdims=True)
    xc = x - mu
    var = jnp.mean(xc * xc, axis=-1, keepdims=True)
    inv_std = lax.rsqrt(var + jnp.float32(eps))
    out_ref[...] = (xc * inv_std * gamma + beta).astype(out_ref.dtype)


def _attn_kernel_split(v_ref, okT_ref, ov_ref, wq_ref, wk_ref, wv_ref,
                       gamma_ref, beta_ref, out_ref, *, temperature, eps):
    v = v_ref[...]                                   # (tn, E) f32 (residual path)
    vm = v.astype(wq_ref.dtype)                      # MXU operand dtype
    vq = jnp.dot(vm, wq_ref[...], preferred_element_type=jnp.float32)
    vk = jnp.dot(vm, wk_ref[...], preferred_element_type=jnp.float32)
    vv = jnp.dot(vm, wv_ref[...], preferred_element_type=jnp.float32)
    _attention_body(v, vq, vk, vv, okT_ref[...], ov_ref[...],
                    gamma_ref[...], beta_ref[...], out_ref,
                    temperature=temperature, eps=eps)


def _attn_kernel_fused(v_ref, okT_ref, ov_ref, wqkv_ref,
                       gamma_ref, beta_ref, out_ref, *, temperature, eps, embed_size):
    v = v_ref[...]                                   # (tn, E)
    vm = v.astype(wqkv_ref.dtype)
    p = jnp.dot(vm, wqkv_ref[...], preferred_element_type=jnp.float32)   # (tn, 3E)
    E = embed_size                                   # E % 128 == 0 -> aligned slices
    vq = p[:, :E]
    vk = p[:, E:2 * E]
    vv = p[:, 2 * E:3 * E]
    _attention_body(v, vq, vk, vv, okT_ref[...], ov_ref[...],
                    gamma_ref[...], beta_ref[...], out_ref,
                    temperature=temperature, eps=eps)


def _pick_row_tile(Nv, E, tn_req):
    """Large row tile, multiple of 8, >=2 grid steps when possible, VMEM-safe."""
    itemsize = 4
    budget = 24 * 1024 * 1024                     # conservative across v5e/v6e/v7x
    tn_vmem = max(8, budget // (4 * E * itemsize))  # 2x double-buffered in + out
    tn = min(int(tn_req), int(tn_vmem))
    if Nv >= 16:
        # v7x has 2 TensorCores: never collapse to a grid of 1 if Nv allows a split.
        tn = min(tn, _round_up(pl.cdiv(Nv, 2), 8))
        tn = max(8, _round_up(tn, 8))
    else:
        tn = Nv   # single full-extent block (allowed even if not a multiple of 8)
    return tn


def attention_forward(v_code, obs_code, params, *, temperature, tn=1024,
                      use_bf16_matmul=False):
    """Fused Pallas forward of the Attention module.

    v_code: (Nv, E), obs_code: (No, E).
    params = (wq, wk, wv, gamma, beta); wq/wk/wv are (E, E) stored (in, out)
    so that y = x @ w (equivalent to torch's Lin with bias=False).
    """
    wq, wk, wv, gamma, beta = params
    Nv, E = v_code.shape
    No = obs_code.shape[0]

    f32 = jnp.float32
    mm_dtype = jnp.bfloat16 if use_bf16_matmul else jnp.float32

    # Grid-invariant obs projections hoisted out of the kernel; key pre-transposed.
    obs_f32 = obs_code.astype(f32)
    obs_keyT = (obs_f32 @ wk.astype(f32)).T.astype(mm_dtype)     # (E, No)
    obs_value = (obs_f32 @ wv.astype(f32)).astype(mm_dtype)      # (No, E)

    gamma2 = gamma.reshape(1, E).astype(f32)
    beta2 = beta.reshape(1, E).astype(f32)
    v_in = v_code.astype(f32)                                    # residual stays f32

    tile = _pick_row_tile(Nv, E, tn)
    grid = pl.cdiv(Nv, tile)

    if E % 128 == 0:
        # Fused [Wq | Wk | Wv]: one wide MXU matmul per tile, lane-aligned slices.
        wqkv = jnp.concatenate([wq, wk, wv], axis=1).astype(mm_dtype)   # (E, 3E)
        kernel = functools.partial(_attn_kernel_fused,
                                   temperature=float(temperature), eps=1e-6,
                                   embed_size=E)
        weight_args = (wqkv,)
    else:
        kernel = functools.partial(_attn_kernel_split,
                                   temperature=float(temperature), eps=1e-6)
        weight_args = (wq.astype(mm_dtype), wk.astype(mm_dtype), wv.astype(mm_dtype))

    def _full(a):
        return pl.BlockSpec(a.shape, lambda i: (0, 0))          # resident full block

    out = pl.pallas_call(
        kernel,
        out_shape=jax.ShapeDtypeStruct((Nv, E), jnp.float32),
        grid_spec=pltpu.PrefetchScalarGridSpec(
            num_scalar_prefetch=0,
            grid=(grid,),
            in_specs=[pl.BlockSpec((tile, E), lambda i: (i, 0))]   # streamed v rows
                     + [_full(obs_keyT), _full(obs_value)]
                     + [_full(w) for w in weight_args]
                     + [_full(gamma2), _full(beta2)],
            out_specs=pl.BlockSpec((tile, E), lambda i: (i, 0)),
        ),
        compiler_params=pltpu.CompilerParams(
            dimension_semantics=("parallel",),
            vmem_limit_bytes=32 * 1024 * 1024),
    )(v_in, obs_keyT, obs_value, *weight_args, gamma2, beta2)

    return out


def init_params(key, embed_size):
    """Synthetic parameters matching Attention.__init__ shapes."""
    E = embed_size
    ks = jax.random.split(key, 5)
    s = 0.3
    wk = jax.random.normal(ks[0], (E, E), jnp.float32) * s
    wq = jax.random.normal(ks[1], (E, E), jnp.float32) * s
    wv = jax.random.normal(ks[2], (E, E), jnp.float32) * s
    gamma = 1.0 + 0.1 * jax.random.normal(ks[3], (E,), jnp.float32)
    beta = 0.1 * jax.random.normal(ks[4], (E,), jnp.float32)
    return (wq, wk, wv, gamma, beta)


def ref_forward(v_code, obs_code, params, *, temperature):
    """Plain-JAX reference matching the PyTorch forward semantics."""
    wq, wk, wv, gamma, beta = params
    v_value = v_code @ wv
    obs_value = obs_code @ wv
    v_query = v_code @ wq
    v_key = v_code @ wk
    obs_key = obs_code @ wk

    obs_attention = v_query @ obs_key.T
    self_attention = jnp.sum(v_query * v_key, axis=-1)
    whole = jnp.concatenate([self_attention[:, None], obs_attention], axis=-1)
    whole = jax.nn.softmax(whole / temperature, axis=-1)

    values = jnp.concatenate(
        [v_value[:, None, :],
         jnp.broadcast_to(obs_value[None], (v_code.shape[0],) + obs_value.shape)],
        axis=1)
    v_new = jnp.sum(whole[..., None] * values, axis=1)

    x = v_new + v_code
    mu = x.mean(-1, keepdims=True)
    var = ((x - mu) ** 2).mean(-1, keepdims=True)
    return (x - mu) / jnp.sqrt(var + 1e-6) * gamma + beta


if __name__ == "__main__":
    def run_case(embed_size, Nv, No, temperature):
        key = jax.random.PRNGKey(0)
        kp, kv, ko = jax.random.split(key, 3)
        params = init_params(kp, embed_size)
        v_code = jax.random.normal(kv, (Nv, embed_size), jnp.float32)
        obs_code = jax.random.normal(ko, (No, embed_size), jnp.float32)

        out = attention_forward(v_code, obs_code, params, temperature=temperature)
        out = jax.block_until_ready(out)

        ref = ref_forward(v_code, obs_code, params, temperature=temperature)
        assert out.shape == (Nv, embed_size)
        err = float(jnp.max(jnp.abs(out - ref)))
        assert jnp.allclose(out, ref, atol=5e-3, rtol=5e-3), f"mismatch, max err {err}"

    # E = 32: split-QKV kernel path (E % 128 != 0), grid of 2 (v7x-friendly).
    run_case(32, 128, 16, 2.0)
    # E = 128: fused [Wq|Wk|Wv] kernel path; Nv=200 exercises the masked
    # boundary block (no wrapper-side padding copy).
    run_case(128, 200, 24, 1.5)

    print("KERNEL_OK")
</pallas_src>

<mosaic_0001>
module attributes {stable_mosaic.version = 11 : i64} {
  func.func @_attn_kernel_split(%arg0: i32, %arg1: memref<64x32xf32, #tpu.memory_space<vmem>>, %arg2: memref<32x16xf32, #tpu.memory_space<vmem>>, %arg3: memref<16x32xf32, #tpu.memory_space<vmem>>, %arg4: memref<32x32xf32, #tpu.memory_space<vmem>>, %arg5: memref<32x32xf32, #tpu.memory_space<vmem>>, %arg6: memref<32x32xf32, #tpu.memory_space<vmem>>, %arg7: memref<1x32xf32, #tpu.memory_space<vmem>>, %arg8: memref<1x32xf32, #tpu.memory_space<vmem>>, %arg9: memref<64x32xf32, #tpu.memory_space<vmem>>) attributes {dimension_semantics = [#tpu.dimension_semantics<parallel>], iteration_bounds = array<i64: 2>, scalar_prefetch = 0 : i64, scratch_operands = 0 : i64, tpu.core_type = #tpu.core_type<tc>, window_params = [{transform_indices = @transform_0, window_bounds = array<i64: 64, 32>}, {pipeline_mode = #tpu.pipeline_mode<synchronous>, transform_indices = @transform_1, window_bounds = array<i64: 32, 16>}, {pipeline_mode = #tpu.pipeline_mode<synchronous>, transform_indices = @transform_2, window_bounds = array<i64: 16, 32>}, {pipeline_mode = #tpu.pipeline_mode<synchronous>, transform_indices = @transform_3, window_bounds = array<i64: 32, 32>}, {pipeline_mode = #tpu.pipeline_mode<synchronous>, transform_indices = @transform_4, window_bounds = array<i64: 32, 32>}, {pipeline_mode = #tpu.pipeline_mode<synchronous>, transform_indices = @transform_5, window_bounds = array<i64: 32, 32>}, {pipeline_mode = #tpu.pipeline_mode<synchronous>, transform_indices = @transform_6, window_bounds = array<i64: 1, 32>}, {pipeline_mode = #tpu.pipeline_mode<synchronous>, transform_indices = @transform_7, window_bounds = array<i64: 1, 32>}, {transform_indices = @transform_8, window_bounds = array<i64: 64, 32>}]} {
    %c0 = arith.constant 0 : index
    %c0_0 = arith.constant 0 : index
    %0 = vector.load %arg1[%c0, %c0_0] : memref<64x32xf32, #tpu.memory_space<vmem>>, vector<64x32xf32>
    %c0_1 = arith.constant 0 : index
    %c0_2 = arith.constant 0 : index
    %1 = vector.load %arg4[%c0_1, %c0_2] : memref<32x32xf32, #tpu.memory_space<vmem>>, vector<32x32xf32>
    %cst = arith.constant dense<0.000000e+00> : vector<64x32xf32>
    %2 = tpu.matmul %0, %1, %cst {dimension_numbers = #tpu.dot_dimension_numbers<[1], [0], [0], [1], [0, 0, 1, 1], [], []>} : vector<64x32xf32>, vector<32x32xf32>, vector<64x32xf32> -> vector<64x32xf32>
    %c0_3 = arith.constant 0 : index
    %c0_4 = arith.constant 0 : index
    %3 = vector.load %arg5[%c0_3, %c0_4] : memref<32x32xf32, #tpu.memory_space<vmem>>, vector<32x32xf32>
    %cst_5 = arith.constant dense<0.000000e+00> : vector<64x32xf32>
    %4 = tpu.matmul %0, %3, %cst_5 {dimension_numbers = #tpu.dot_dimension_numbers<[1], [0], [0], [1], [0, 0, 1, 1], [], []>} : vector<64x32xf32>, vector<32x32xf32>, vector<64x32xf32> -> vector<64x32xf32>
    %c0_6 = arith.constant 0 : index
    %c0_7 = arith.constant 0 : index
    %5 = vector.load %arg6[%c0_6, %c0_7] : memref<32x32xf32, #tpu.memory_space<vmem>>, vector<32x32xf32>
    %cst_8 = arith.constant dense<0.000000e+00> : vector<64x32xf32>
    %6 = tpu.matmul %0, %5, %cst_8 {dimension_numbers = #tpu.dot_dimension_numbers<[1], [0], [0], [1], [0, 0, 1, 1], [], []>} : vector<64x32xf32>, vector<32x32xf32>, vector<64x32xf32> -> vector<64x32xf32>
    %c0_9 = arith.constant 0 : index
    %c0_10 = arith.constant 0 : index
    %7 = vector.load %arg2[%c0_9, %c0_10] : memref<32x16xf32, #tpu.memory_space<vmem>>, vector<32x16xf32>
    %c0_11 = arith.constant 0 : index
    %c0_12 = arith.constant 0 : index
    %8 = vector.load %arg3[%c0_11, %c0_12] : memref<16x32xf32, #tpu.memory_space<vmem>>, vector<16x32xf32>
    %c0_13 = arith.constant 0 : index
    %c0_14 = arith.constant 0 : index
    %9 = vector.load %arg7[%c0_13, %c0_14] : memref<1x32xf32, #tpu.memory_space<vmem>>, vector<1x32xf32>
    %c0_15 = arith.constant 0 : index
    %c0_16 = arith.constant 0 : index
    %10 = vector.load %arg8[%c0_15, %c0_16] : memref<1x32xf32, #tpu.memory_space<vmem>>, vector<1x32xf32>
    %11 = arith.mulf %2, %4 : vector<64x32xf32>
    %cst_17 = arith.constant dense<0.000000e+00> : vector<64xf32>
    %12 = vector.multi_reduction <add>, %11, %cst_17 [1] : vector<64x32xf32> to vector<64xf32>
    %13 = vector.shape_cast %12 : vector<64xf32> to vector<64x1xf32>
    %cst_18 = arith.constant 5.000000e-01 : f32
    %14 = vector.broadcast %cst_18 : f32 to vector<64x1xf32>
    %15 = arith.mulf %13, %14 : vector<64x1xf32>
    %cst_19 = arith.constant dense<0.000000e+00> : vector<64x16xf32>
    %16 = tpu.matmul %2, %7, %cst_19 {dimension_numbers = #tpu.dot_dimension_numbers<[1], [0], [0], [1], [0, 0, 1, 1], [], []>} : vector<64x32xf32>, vector<32x16xf32>, vector<64x16xf32> -> vector<64x16xf32>
    %cst_20 = arith.constant 5.000000e-01 : f32
    %17 = vector.broadcast %cst_20 : f32 to vector<64x16xf32>
    %18 = arith.mulf %16, %17 : vector<64x16xf32>
    %cst_21 = arith.constant dense<0xFF800000> : vector<64xf32>
    %19 = vector.multi_reduction <maximumf>, %18, %cst_21 [1] : vector<64x16xf32> to vector<64xf32>
    %20 = vector.shape_cast %19 : vector<64xf32> to vector<64x1xf32>
    %21 = arith.maximumf %20, %15 : vector<64x1xf32>
    %22 = arith.subf %15, %21 : vector<64x1xf32>
    %23 = math.exp %22 : vector<64x1xf32>
    %24 = vector.broadcast %21 : vector<64x1xf32> to vector<64x16xf32>
    %25 = arith.subf %18, %24 : vector<64x16xf32>
    %26 = math.exp %25 : vector<64x16xf32>
    %cst_22 = arith.constant dense<0.000000e+00> : vector<64xf32>
    %27 = vector.multi_reduction <add>, %26, %cst_22 [1] : vector<64x16xf32> to vector<64xf32>
    %28 = vector.shape_cast %27 : vector<64xf32> to vector<64x1xf32>
    %29 = arith.addf %23, %28 : vector<64x1xf32>
    %30 = tpu.reciprocal %29 {approx = true} : vector<64x1xf32> -> vector<64x1xf32>
    %31 = arith.mulf %23, %30 : vector<64x1xf32>
    %32 = vector.broadcast %30 : vector<64x1xf32> to vector<64x16xf32>
    %33 = arith.mulf %26, %32 : vector<64x16xf32>
    %34 = vector.broadcast %31 : vector<64x1xf32> to vector<64x32xf32>
    %35 = arith.mulf %34, %6 : vector<64x32xf32>
    %cst_23 = arith.constant dense<0.000000e+00> : vector<64x32xf32>
    %36 = tpu.matmul %33, %8, %cst_23 {dimension_numbers = #tpu.dot_dimension_numbers<[1], [0], [0], [1], [0, 0, 1, 1], [], []>} : vector<64x16xf32>, vector<16x32xf32>, vector<64x32xf32> -> vector<64x32xf32>
    %37 = arith.addf %35, %36 : vector<64x32xf32>
    %38 = arith.addf %37, %0 : vector<64x32xf32>
    %cst_24 = arith.constant dense<0.000000e+00> : vector<64xf32>
    %39 = vector.multi_reduction <add>, %38, %cst_24 [1] : vector<64x32xf32> to vector<64xf32>
    %40 = vector.shape_cast %39 : vector<64xf32> to vector<64x1xf32>
    %cst_25 = arith.constant 3.200000e+01 : f32
    %41 = vector.broadcast %cst_25 : f32 to vector<64x1xf32>
    %42 = arith.divf %40, %41 : vector<64x1xf32>
    %43 = vector.broadcast %42 : vector<64x1xf32> to vector<64x32xf32>
    %44 = arith.subf %38, %43 : vector<64x32xf32>
    %45 = arith.mulf %44, %44 : vector<64x32xf32>
    %cst_26 = arith.constant dense<0.000000e+00> : vector<64xf32>
    %46 = vector.multi_reduction <add>, %45, %cst_26 [1] : vector<64x32xf32> to vector<64xf32>
    %47 = vector.shape_cast %46 : vector<64xf32> to vector<64x1xf32>
    %cst_27 = arith.constant 3.200000e+01 : f32
    %48 = vector.broadcast %cst_27 : f32 to vector<64x1xf32>
    %49 = arith.divf %47, %48 : vector<64x1xf32>
    %cst_28 = arith.constant 9.99999997E-7 : f32
    %50 = vector.broadcast %cst_28 : f32 to vector<64x1xf32>
    %51 = arith.addf %49, %50 : vector<64x1xf32>
    %52 = math.rsqrt %51 : vector<64x1xf32>
    %53 = vector.broadcast %52 : vector<64x1xf32> to vector<64x32xf32>
    %54 = arith.mulf %44, %53 : vector<64x32xf32>
    %55 = vector.broadcast %9 : vector<1x32xf32> to vector<64x32xf32>
    %56 = arith.mulf %54, %55 : vector<64x32xf32>
    %57 = vector.broadcast %10 : vector<1x32xf32> to vector<64x32xf32>
    %58 = arith.addf %56, %57 : vector<64x32xf32>
    %c0_29 = arith.constant 0 : index
    %c0_30 = arith.constant 0 : index
    %59 = vector.load %arg9[%c0_29, %c0_30] : memref<64x32xf32, #tpu.memory_space<vmem>>, vector<64x32xf32>
    tpu.vector_store %arg9[%c0_29, %c0_30], %58 {strides = array<i32>} : memref<64x32xf32, #tpu.memory_space<vmem>>, vector<64x32xf32>,
    return
  }
  func.func @transform_0(%arg0: i32) -> (i32, i32) {
    %c0_i32 = arith.constant 0 : i32
    %c0_i32_0 = arith.constant 0 : i32
    return %arg0, %c0_i32 : i32, i32
  }
  func.func @transform_1(%arg0: i32) -> (i32, i32) {
    %c0_i32 = arith.constant 0 : i32
    %c0_i32_0 = arith.constant 0 : i32
    %c0_i32_1 = arith.constant 0 : i32
    return %c0_i32, %c0_i32_0 : i32, i32
  }
  func.func @transform_2(%arg0: i32) -> (i32, i32) {
    %c0_i32 = arith.constant 0 : i32
    %c0_i32_0 = arith.constant 0 : i32
    %c0_i32_1 = arith.constant 0 : i32
    return %c0_i32, %c0_i32_0 : i32, i32
  }
  func.func @transform_3(%arg0: i32) -> (i32, i32) {
    %c0_i32 = arith.constant 0 : i32
    %c0_i32_0 = arith.constant 0 : i32
    %c0_i32_1 = arith.constant 0 : i32
    return %c0_i32, %c0_i32_0 : i32, i32
  }
  func.func @transform_4(%arg0: i32) -> (i32, i32) {
    %c0_i32 = arith.constant 0 : i32
    %c0_i32_0 = arith.constant 0 : i32
    %c0_i32_1 = arith.constant 0 : i32
    return %c0_i32, %c0_i32_0 : i32, i32
  }
  func.func @transform_5(%arg0: i32) -> (i32, i32) {
    %c0_i32 = arith.constant 0 : i32
    %c0_i32_0 = arith.constant 0 : i32
    %c0_i32_1 = arith.constant 0 : i32
    return %c0_i32, %c0_i32_0 : i32, i32
  }
  func.func @transform_6(%arg0: i32) -> (i32, i32) {
    %c0_i32 = arith.constant 0 : i32
    %c0_i32_0 = arith.constant 0 : i32
    %c0_i32_1 = arith.constant 0 : i32
    return %c0_i32, %c0_i32_0 : i32, i32
  }
  func.func @transform_7(%arg0: i32) -> (i32, i32) {
    %c0_i32 = arith.constant 0 : i32
    %c0_i32_0 = arith.constant 0 : i32
    %c0_i32_1 = arith.constant 0 : i32
    return %c0_i32, %c0_i32_0 : i32, i32
  }
  func.func @transform_8(%arg0: i32) -> (i32, i32) {
    %c0_i32 = arith.constant 0 : i32
    %c0_i32_0 = arith.constant 0 : i32
    return %arg0, %c0_i32 : i32, i32
  }
}

</mosaic_0001>

<bundles_post_ra>
// kernel: tpu_custom_call.1
= control target key start
LH: loop header
LB: loop body
LE: loop exit
PB: predicated region body
PF: predicated region fallthrough
CT: control target
= control target key end

     0   :  { %s1713_s27 = smov 0   ;;  %s2123_s0 = inlined_call_operand.vmem [shape: f32[128,32], index: 0, kind: input, shape index: {}]   ;;  %s2124_s1 = inlined_call_operand.vmem [shape: f32[32,16], index: 1, kind: input, shape index: {}]   ;;  %s2125_s2 = inlined_call_operand.vmem [shape: f32[16,32], index: 2, kind: input, shape index: {}]   ;;  %s2126_s3 = inlined_call_operand.vmem [shape: f32[32,32], index: 3, kind: input, shape index: {}]   ;;  %s2127_s4 = inlined_call_operand.vmem [shape: f32[32,32], index: 4, kind: input, shape index: {}]   ;;  %s2128_s5 = inlined_call_operand.vmem [shape: f32[32,32], index: 5, kind: input, shape index: {}]   ;;  %s2129_s6 = inlined_call_operand.vmem [shape: f32[1,32], index: 6, kind: input, shape index: {}]   ;;  %s2130_s7 = inlined_call_operand.vmem [shape: f32[1,32], index: 7, kind: input, shape index: {}]   ;;  %s2131_s8 = inlined_call_operand.vmem [shape: f32[128,32], index: 8, kind: output, shape index: {}]  }
   0x1 LB: > { %s1341_s28 = sadd.s32 4294967295, %s1666_s27   ;;  %p1345_p0 = scmp.ge.s32.totalorder %s1666_s27, 1  ;;  %s1666_s27 = sphi %s1713_s27, %s18_s27  }
   0x2   : > { %p263_p1 = scmp.lt.s32.totalorder %s1666_s27, 3 }
   0x4   : > { %p264_p2 = pnand %p1345_p0, %p263_p1 }
   0x5   : > { %v317_v0 = vld [vmem:[%s2126_s3] sm:$0xff] (!%p264_p2)  ;;  %v318_v1 = vld [vmem:[%s2126_s3 + $0x8] sm:$0xff] (!%p264_p2)  ;;  %v319_v2 = vld [vmem:[%s2126_s3 + $0x10] sm:$0xff] (!%p264_p2)  ;;  %s1346_s13 = sshll.u32 (!%p264_p2), %s1341_s28, 3  ;;  %vm321_vm0 = vcmask (!%p264_p2), 261120   ;;  %vm854_vm1 = vcmask (!%p264_p2), 130048  }
   0x6   : > { %267 = sbr.rel (%p264_p2) target bundleno = 1315 (0x523), region = 52  ;;  %v1548_v3 = vpack.c.bf16 (!%p264_p2), %v318_v1, %v317_v0  ;;  %v320_v4 = vld [vmem:[%s2126_s3 + $0x18] sm:$0xff] (!%p264_p2)  ;;  %p298_p3 = scmp.lt.s32.totalorder (!%p264_p2), %s1346_s13, 15  ;;  %v451_v6 = vld [vmem:[%s2127_s4] sm:$0xff] (!%p264_p2)  ;;  %v452_v7 = vld [vmem:[%s2127_s4 + $0x8] sm:$0xff] (!%p264_p2) }
   0x7   : > { %v1552_v5 = vpack.c.bf16 (!%p264_p2), %v320_v4, %v319_v2  ;;  %v1556_v8 = vpack.c.bf16 (!%p264_p2), %v452_v7, %v451_v6  ;;  %v453_v9 = vld [vmem:[%s2127_s4 + $0x10] sm:$0xff] (!%p264_p2)  ;;  %v454_v10 = vld [vmem:[%s2127_s4 + $0x18] sm:$0xff] (!%p264_p2)  ;;  %v669_v18 = vld [vmem:[%s2124_s1] sm:$0xff] (!%p264_p2) }
   0x8   : > { %1549 = vmatprep.subr.bf16.mxu0 (!%p264_p2), %v1548_v3  ;;  %1584 = vmatprep.subr.bf16.mxu1 (!%p264_p2), %v1548_v3  ;;  %v1560_v16 = vpack.c.bf16 (!%p264_p2), %v454_v10, %v453_v9  ;;  %v670_v19 = vld [vmem:[%s2124_s1 + $0x8] sm:$0xff] (!%p264_p2)  ;;  %v671_v23 = vld [vmem:[%s2124_s1 + $0x10] sm:$0xff] (!%p264_p2)  ;;  %v672_v24 = vld [vmem:[%s2124_s1 + $0x18] sm:$0xff] (!%p264_p2) }
   0x9   : > { %1551 = vmatpush3.bf16.msra.mxu0 (!%p264_p2), %v1548_v3  ;;  %1586 = vmatpush3.bf16.msra.mxu1 (!%p264_p2), %v1548_v3  ;;  %v1572_v22 = vpack.c.bf16 (!%p264_p2), %v670_v19, %v669_v18  ;;  %v1576_v25 = vpack.c.bf16 (!%p264_p2), %v672_v24, %v671_v23  ;;  %v560_v57 = vld [vmem:[%s2128_s5] sm:$0xff] (!%p264_p2)  ;;  %v561_v58 = vld [vmem:[%s2128_s5 + $0x8] sm:$0xff] (!%p264_p2)  ;;  %v562_v59 = vld [vmem:[%s2128_s5 + $0x10] sm:$0xff] (!%p264_p2) }
   0xa   : > { %1553 = vmatprep.subr.bf16.mxu0 (!%p264_p2), %v1552_v5  ;;  %1585 = vmatprep.subr.bf16.mxu1 (!%p264_p2), %v1552_v5  ;;  %v1564_v60 = vpack.c.bf16 (!%p264_p2), %v561_v58, %v560_v57  ;;  %v563_v61 = vld [vmem:[%s2128_s5 + $0x18] sm:$0xff] (!%p264_p2) }
   0xb   : > { %v1568_v62 = vpack.c.bf16 (!%p264_p2), %v563_v61, %v562_v59 }
   0xd   : > { %s2133_s13 = smov (!%p298_p3, %s1346_s13), 15  ;;  %1555 = vmatpush3.bf16.msra.mxu0 %v1552_v5  ;;  %1587 = vmatpush3.bf16.msra.mxu1 %v1552_v5 }
   0xe   : > { %s1347_s20 = sshll.u32 %s2133_s13, 3  ;;  %1557 = vmatprep.subr.bf16.mxu1 %v1556_v8  ;;  %1565 = vmatprep.subr.bf16.mxu0 %v1564_v60 }
   0xf   : > { %s301_s23 = scalar_lea.vmem %s2123_s0, %s1347_s20  ;;  %s2096_s15 = scalar_lea.vmem %s2131_s8, %s1347_s20 }
  0x10   : > { %v1753_v11 = vld [vmem:[%s301_s23] sm:$0xff]  ;;  %v1757_v13 = vld [vmem:[%s301_s23 + $0x8] sm:$0xff]  ;;  %v1765_v15 = vld [vmem:[%s301_s23 + $0x10] sm:$0xff] }
  0x11   : > { %v1755_v12 = vld [vmem:[%s301_s23 + $0x20] sm:$0xff]  ;;  %v1759_v14 = vld [vmem:[%s301_s23 + $0x28] sm:$0xff]  ;;  %1460 = vmatprep.mubr.msk.f32.mxu0 %vm321_vm0, %v1753_v11  ;;  %v1767_v17 = vld [vmem:[%s301_s23 + $0x30] sm:$0xff] }
  0x12   : > { %1466 = vmatprep.mubr.msk.f32.mxu1 %vm321_vm0, %v1755_v12  ;;  %1461 = vmatmul.mubr.msk.f32.vlgmr.msra.gmra.mrb[0].mxu0 %vm321_vm0, %v1757_v13  ;;  %v1781_v20 = vld [vmem:[%s301_s23 + $0x18] sm:$0xff] }
  0x13   : > { %1467 = vmatmul.mubr.msk.f32.vlgmr.msra.gmra.mrb[0].mxu1 %vm321_vm0, %v1759_v14  ;;  %1463 = vmatprep.mubr.msk.f32.mxu0 %vm321_vm0, %v1765_v15  ;;  %v1783_v21 = vld [vmem:[%s301_s23 + $0x38] sm:$0xff] }
  0x14   : > { %1559 = vmatpush3.bf16.msra.mxu1 %v1556_v8  ;;  %1469 = vmatprep.mubr.msk.f32.mxu1 %vm321_vm0, %v1767_v17 }
  0x15   : > { %1561 = vmatprep.subr.bf16.mxu1 %v1560_v16  ;;  %1567 = vmatpush3.bf16.msra.mxu0 %v1564_v60 }
  0x16   : > { %1464 = vmatmul.mubr.msk.f32.gmra.mrb[2].mxu0 %vm321_vm0, %v1781_v20  ;;  %1569 = vmatprep.subr.bf16.mxu0 %v1568_v62 }
  0x17   : > { %1470 = vmatmul.mubr.msk.f32.gmra.mrb[2].mxu1 %vm321_vm0, %v1783_v21  ;;  %1500 = vmatprep.mubr.msk.f32.mxu0 %vm321_vm0, %v1753_v11 }
  0x18   : > { %1563 = vmatpush3.bf16.msra.mxu1 %v1560_v16  ;;  %1480 = vmatprep.mubr.msk.f32.mxu1 %vm321_vm0, %v1753_v11 }
  0x19   : > { %1573 = vmatprep.subr.bf16.mxu1 %v1572_v22  ;;  %1571 = vmatpush3.bf16.msra.mxu0 %v1568_v62 }
  0x1b   : > { %1481 = vmatmul.mubr.msk.f32.vlgmr.msra.gmra.mrb[4].mxu1 %vm321_vm0, %v1757_v13 }
  0x1c   : > { %1483 = vmatprep.mubr.msk.f32.mxu1 %vm321_vm0, %v1765_v15  ;;  %1575 = vmatpush3.bf16.msra.mxu1 %v1572_v22 }
  0x1d   : > { %1577 = vmatprep.subr.bf16.mxu1 %v1576_v25  ;;  %1501 = vmatmul.mubr.msk.f32.vlgmr.msra.gmra.mrb[4].mxu0 %vm321_vm0, %v1757_v13 }
  0x1e   : > { %1503 = vmatprep.mubr.msk.f32.mxu0 %vm321_vm0, %v1765_v15 }
  0x1f   : > { %1484 = vmatmul.mubr.msk.f32.gmra.mrb[6].mxu1 %vm321_vm0, %v1781_v20 }
  0x20   : > { %1486 = vmatprep.mubr.msk.f32.mxu1 %vm321_vm0, %v1755_v12  ;;  %1579 = vmatpush3.bf16.msra.mxu1 %v1576_v25 }
  0x21   : > { %1504 = vmatmul.mubr.msk.f32.gmra.mrb[6].mxu0 %vm321_vm0, %v1781_v20 }
  0x22   : > { %1506 = vmatprep.mubr.msk.f32.mxu0 %vm321_vm0, %v1755_v12 }
  0x23   : > { %1487 = vmatmul.mubr.msk.f32.gmra.mrb[8].mxu1 %vm321_vm0, %v1759_v14 }
  0x24   : > { %1489 = vmatprep.mubr.msk.f32.mxu1 %vm321_vm0, %v1767_v17 }
  0x25   : > { %1507 = vmatmul.mubr.msk.f32.gmra.mrb[8].mxu0 %vm321_vm0, %v1759_v14 }
  0x26   : > { %1509 = vmatprep.mubr.msk.f32.mxu0 %vm321_vm0, %v1767_v17 }
  0x27   : > { %1490 = vmatmul.mubr.msk.f32.gmra.mrb[10].mxu1 %vm321_vm0, %v1783_v21 }
  0x29   : > { %1510 = vmatmul.mubr.msk.f32.gmra.mrb[10].mxu0 %vm321_vm0, %v1783_v21 }
  0xe5   : > { %v1462_v26 = vpop.f32.mrb[0].mxu0 }
  0xe6   : > { %v1468_v27 = vpop.f32.mrb[0].mxu1  ;;  %v412_v28 = vpop.f32.mrb[1].mxu0 }
  0xe7   : > { %v432_v29 = vpop.f32.mrb[1].mxu1  ;;  %1520 = vmatprep.mubr.msk.f32.mxu1 %vm321_vm0, %v412_v28 }
  0xe8   : > { %1521 = vmatmul.mubr.msk.f32.vlgmr.msra.gmra.mrb[12].mxu1 %vm321_vm0, %v1462_v26 }
  0xe9   : > { %v1465_v30 = vpop.f32.mrb[2].mxu0 }
  0xea   : > { %v1471_v31 = vpop.f32.mrb[2].mxu1  ;;  %v422_v32 = vpop.f32.mrb[3].mxu0 }
  0xeb   : > { %v442_v33 = vpop.f32.mrb[3].mxu1  ;;  %1523 = vmatprep.mubr.msk.f32.mxu1 %vm321_vm0, %v422_v32 }
  0xec   : > { %1524 = vmatmul.mubr.msk.f32.gmra.mrb[14].mxu1 %vm321_vm0, %v1465_v30 }
  0xed   : > { %1526 = vmatprep.mubr.msk.f32.mxu1 %vm321_vm0, %v432_v29 }
  0xee   : > { %v1482_v34 = vpop.f32.mrb[4].mxu1 }
  0xef   : > { %v678_v35 = vmul.f32 %v1482_v34, %v1462_v26  ;;  %v521_v36 = vpop.f32.mrb[5].mxu1 }
  0xf0   : > { %v677_v37 = vmul.f32 %v521_v36, %v412_v28  ;;  %1527 = vmatmul.mubr.msk.f32.gmra.mrb[16].mxu1 %vm321_vm0, %v1468_v27 }
  0xf1   : > { %v688_v38 = vsel %vm321_vm0, %v678_v35, 0.0  ;;  %1529 = vmatprep.mubr.msk.f32.mxu1 %vm321_vm0, %v442_v33 }
  0xf2   : > { %v1485_v39 = vpop.f32.mrb[6].mxu1  ;;  %689 = vadd.xlane.f32.xlu0 %v688_v38  ;;  %v685_v43 = vsel %vm321_vm0, %v677_v37, 0.0 }
  0xf3   : > { %v680_v40 = vmul.f32 %v1485_v39, %v1465_v30  ;;  %v531_v41 = vpop.f32.mrb[7].mxu1 }
  0xf4   : > { %v679_v42 = vmul.f32 %v531_v41, %v422_v32  ;;  %1530 = vmatmul.mubr.msk.f32.gmra.mrb[18].mxu1 %vm321_vm0, %v1471_v31 }
  0xf5   : > { %v694_v44 = vsel %vm321_vm0, %v680_v40, 0.0 }
  0xf6   : > { %v1488_v45 = vpop.f32.mrb[8].mxu1  ;;  %686 = vadd.xlane.f32.xlu0 %v685_v43  ;;  %695 = vadd.xlane.f32.xlu1 %v694_v44  ;;  %v691_v50 = vsel %vm321_vm0, %v679_v42, 0.0 }
  0xf7   : > { %v682_v46 = vmul.f32 %v1488_v45, %v1468_v27  ;;  %v541_v47 = vpop.f32.mrb[9].mxu1 }
  0xf8   : > { %v681_v48 = vmul.f32 %v541_v47, %v432_v29 }
  0xf9   : > { %v700_v49 = vsel %vm321_vm0, %v682_v46, 0.0 }
  0xfa   : > { %v1491_v51 = vpop.f32.mrb[10].mxu1  ;;  %701 = vadd.xlane.f32.xlu1 %v700_v49  ;;  %692 = vadd.xlane.f32.xlu0 %v691_v50  ;;  %v697_v55 = vsel %vm321_vm0, %v681_v48, 0.0 }
  0xfb   : > { %v684_v52 = vmul.f32 %v1491_v51, %v1471_v31  ;;  %v551_v53 = vpop.f32.mrb[11].mxu1 }
  0xfc   : > { %v683_v54 = vmul.f32 %v551_v53, %v442_v33 }
  0xfd   : > { %v706_v19 = vsel %vm321_vm0, %v684_v52, 0.0 }
  0xfe   : > { %698 = vadd.xlane.f32.xlu0 %v697_v55  ;;  %v703_v56 = vsel %vm321_vm0, %v683_v54, 0.0 }
 0x102   : > { %704 = vadd.xlane.f32.xlu0 %v703_v56 }
 0x17f   : > { %v690_v32 = vpop.xlane.xlu0 %689 }
 0x180   : > { %v1874_v38 = vmul.f32 0.5, %v690_v32 }
 0x183   : > { %v687_v33 = vpop.xlane.xlu0 %686  ;;  %v696_v35 = vpop.xlane.xlu1 %695 }
 0x184   : > { %v1879_v42 = vmul.f32 0.5, %v687_v33  ;;  %v1903_v61 = vmul.f32 0.5, %v696_v35 }
 0x187   : > { %v693_v34 = vpop.xlane.xlu0 %692  ;;  %v702_v37 = vpop.xlane.xlu1 %701 }
 0x188   : > { %v1884_v45 = vmul.f32 0.5, %v693_v34 }
 0x18b   : > { %v699_v36 = vpop.xlane.xlu0 %698 }
 0x18c   : > { %v1895_v53 = vmul.f32 0.5, %v699_v36 }
 0x18f   : > { %v705_v40 = vpop.xlane.xlu0 %704 }
 0x190   : > { %v1905_v62 = vmul.f32 0.5, %v705_v40 }
 0x1bb   : > { %v1522_v63 = vpop.f32.mrb[12].mxu1 }
 0x1bc   : > { %v847_v0 = vmul.f32 0.5, %v1522_v63  ;;  %v807_v1 = vpop.f32.mrb[13].mxu1 }
 0x1bd   : > { %v846_v2 = vmul.f32 0.5, %v807_v1 }
 0x1be   : > { %v858_v3 = vsel %vm854_vm1, %v847_v0, -inf }
 0x1bf   : > { %859 = vmax.xlane.f32.xlu1 %v858_v3  ;;  %v1525_v4 = vpop.f32.mrb[14].mxu1  ;;  %v855_v7 = vsel %vm854_vm1, %v846_v2, -inf }
 0x1c0   : > { %v817_v5 = vpop.f32.mrb[15].mxu1  ;;  %v1859_v18 = vmul.f32 0.5, %v1525_v4 }
 0x1c1   : > { %v848_v6 = vmul.f32 0.5, %v817_v5 }
 0x1c2   : > { %v864_v27 = vsel %vm854_vm1, %v1859_v18, -inf }
 0x1c3   : > { %856 = vmax.xlane.f32.xlu1 %v855_v7  ;;  %v1528_v8 = vpop.f32.mrb[16].mxu1  ;;  %v861_v9 = vsel %vm854_vm1, %v848_v6, -inf }
 0x1c4   : > { %v827_v10 = vpop.f32.mrb[17].mxu1  ;;  %862 = vmax.xlane.f32.xlu0 %v861_v9  ;;  %v1863_v26 = vmul.f32 0.5, %v1528_v8 }
 0x1c5   : > { %v850_v16 = vmul.f32 0.5, %v827_v10 }
 0x1c6   : > { %v870_v30 = vsel %vm854_vm1, %v1863_v26, -inf }
 0x1c7   : > { %707 = vadd.xlane.f32.xlu1 %v706_v19  ;;  %v1531_v22 = vpop.f32.mrb[18].mxu1  ;;  %v867_v23 = vsel %vm854_vm1, %v850_v16, -inf }
 0x1c8   : > { %v837_v24 = vpop.f32.mrb[19].mxu1  ;;  %868 = vmax.xlane.f32.xlu0 %v867_v23  ;;  %v1868_v29 = vmul.f32 0.5, %v1531_v22 }
 0x1c9   : > { %v852_v25 = vmul.f32 0.5, %v837_v24 }
 0x1ca   : > { %v876_v31 = vsel %vm854_vm1, %v1868_v29, -inf }
 0x1cb   : > { %865 = vmax.xlane.f32.xlu1 %v864_v27  ;;  %v873_v28 = vsel %vm854_vm1, %v852_v25, -inf }
 0x1cc   : > { %874 = vmax.xlane.f32.xlu0 %v873_v28 }
 0x1cf   : > { %871 = vmax.xlane.f32.xlu1 %v870_v30 }
 0x1d3   : > { %877 = vmax.xlane.f32.xlu1 %v876_v31 }
 0x24c   : > { %v860_v39 = vpop.xlane.xlu1 %859 }
 0x24d   : > { %v1877_v41 = vmax.f32 %v860_v39, %v1874_v38 }
 0x24f   : > { %v888_v43 = vsub.f32 %v1874_v38, %v1877_v41  ;;  %v912_v44 = vsub.f32 %v847_v0, %v1877_v41 }
 0x250   : > { %v857_v46 = vpop.xlane.xlu1 %856 }
 0x251   : > { %v921_v47 = vmul.f32 1.442695, %v912_v44  ;;  %v1887_v48 = vmax.f32 %v857_v46, %v1879_v42  ;;  %v863_v49 = vpop.xlane.xlu0 %862 }
 0x252   : > { %v1890_v50 = vmax.f32 %v863_v49, %v1884_v45 }
 0x253   : > { %v887_v51 = vsub.f32 %v1879_v42, %v1887_v48  ;;  %v911_v52 = vsub.f32 %v846_v2, %v1887_v48  ;;  %1596 = vpow2.f32 %v921_v47 }
 0x254   : > { %v889_v54 = vsub.f32 %v1884_v45, %v1890_v50  ;;  %v913_v55 = vsub.f32 %v848_v6, %v1890_v50  ;;  %v708_v56 = vpop.xlane.xlu1 %707  ;;  %v1916_v6 = vmul.f32 0.5, %v702_v37 }
 0x255   : > { %v919_v57 = vmul.f32 1.442695, %v911_v52  ;;  %v869_v58 = vpop.xlane.xlu0 %868  ;;  %v1930_v27 = vmul.f32 0.5, %v708_v56 }
 0x256   : > { %v923_v59 = vmul.f32 1.442695, %v913_v55  ;;  %v1901_v60 = vmax.f32 %v869_v58, %v1895_v53  ;;  %v673_v58 = vld [vmem:[%s2125_s2] sm:$0xff] }
 0x257   : > { %1598 = vpow2.f32 %v919_v57 }
 0x258   : > { %v891_v63 = vsub.f32 %v1895_v53, %v1901_v60  ;;  %v915_v0 = vsub.f32 %v850_v16, %v1901_v60  ;;  %v866_v1 = vpop.xlane.xlu1 %865  ;;  %1600 = vpow2.f32 %v923_v59  ;;  %v674_v59 = vld [vmem:[%s2125_s2 + $0x8] sm:$0xff] }
 0x259   : > { %v1911_v2 = vmax.f32 %v866_v1, %v1903_v61  ;;  %v875_v3 = vpop.xlane.xlu0 %874  ;;  %v1502_v1 = vpop.f32.mrb[4].mxu0 }
 0x25a   : > { %v927_v4 = vmul.f32 1.442695, %v915_v0  ;;  %v1914_v5 = vmax.f32 %v875_v3, %v1905_v62  ;;  %v1580_v0 = vpack.c.bf16 %v674_v59, %v673_v58  ;;  %v630_v3 = vpop.f32.mrb[5].mxu0 }
 0x25b   : > { %v890_v7 = vsub.f32 %v1903_v61, %v1911_v2  ;;  %v914_v8 = vsub.f32 %v1859_v18, %v1911_v2 }
 0x25c   : > { %v893_v9 = vsub.f32 %v1905_v62, %v1914_v5  ;;  %v917_v10 = vsub.f32 %v852_v25, %v1914_v5  ;;  %v872_v16 = vpop.xlane.xlu1 %871  ;;  %1602 = vpow2.f32 %v927_v4  ;;  %1581 = vmatprep.subr.bf16.mxu0 %v1580_v0  ;;  %v1975_v4 = vpop.f32.mrb[6].mxu0 }
 0x25d   : > { %v925_v19 = vmul.f32 1.442695, %v914_v8  ;;  %v1926_v22 = vmax.f32 %v872_v16, %v1916_v6  ;;  %v1928_v23 = vpop.eup %1596  ;;  %1583 = vmatpush3.bf16.msra.mxu0 %v1580_v0  ;;  %v901_v38 = vmul.f32 1.442695, %v890_v7 }
 0x25e   : > { %v931_v24 = vmul.f32 1.442695, %v917_v10  ;;  %v938_v25 = vsel %vm854_vm1, %v1928_v23, 0.0  ;;  %v907_v42 = vmul.f32 1.442695, %v893_v9 }
 0x25f   : > { %v892_v28 = vsub.f32 %v1916_v6, %v1926_v22  ;;  %v916_v18 = vsub.f32 %v1863_v26, %v1926_v22  ;;  %1604 = vpow2.f32 %v925_v19  ;;  %939 = vadd.xlane.f32.xlu1 %v938_v25  ;;  %v1977_v6 = vpop.f32.mrb[7].mxu0  ;;  %v897_v22 = vmul.f32 1.442695, %v888_v43 }
 0x260   : > { %v878_v30 = vpop.xlane.xlu1 %877  ;;  %1606 = vpow2.f32 %v931_v24  ;;  %v1979_v8 = vpop.f32.mrb[8].mxu0  ;;  %v895_v24 = vmul.f32 1.442695, %v887_v51 }
 0x261   : > { %v929_v31 = vmul.f32 1.442695, %v916_v18  ;;  %v886_v32 = vmax.f32 %v878_v30, %v1930_v27  ;;  %v1939_v33 = vpop.eup %1598  ;;  %v1981_v10 = vpop.f32.mrb[9].mxu0  ;;  %v903_v18 = vmul.f32 1.442695, %v891_v63 }
 0x262   : > { %v935_v36 = vsel %vm854_vm1, %v1939_v33, 0.0  ;;  %v1945_v26 = vpop.eup %1600  ;;  %v1983_v16 = vpop.f32.mrb[10].mxu0  ;;  %v905_v45 = vmul.f32 1.442695, %v892_v28 }
 0x263   : > { %v894_v34 = vsub.f32 %v1930_v27, %v886_v32  ;;  %v918_v35 = vsub.f32 %v1868_v29, %v886_v32  ;;  %1608 = vpow2.f32 %v929_v31  ;;  %936 = vadd.xlane.f32.xlu0 %v935_v36  ;;  %v941_v39 = vsel %vm854_vm1, %v1945_v26, 0.0  ;;  %v1985_v19 = vpop.f32.mrb[11].mxu0 }
 0x264   : > { %v899_v27 = vmul.f32 1.442695, %v889_v54 }
 0x265   : > { %v933_v37 = vmul.f32 1.442695, %v918_v35  ;;  %v909_v54 = vmul.f32 1.442695, %v894_v34 }
 0x266   : > { %v1949_v40 = vpop.eup %1602 }
 0x267   : > { %1610 = vpow2.f32 %v933_v37  ;;  %942 = vadd.xlane.f32.xlu0 %v941_v39  ;;  %v947_v46 = vsel %vm854_vm1, %v1949_v40, 0.0 }
 0x268   : > { %1612 = vpow2.f32 %v897_v22 }
 0x269   : > { %v1951_v44 = vpop.eup %1604  ;;  %1614 = vpow2.f32 %v895_v24 }
 0x26a   : > { %v944_v29 = vsel %vm854_vm1, %v1951_v44, 0.0  ;;  %v1957_v47 = vpop.eup %1606  ;;  %1616 = vpow2.f32 %v899_v27 }
 0x26b   : > { %945 = vadd.xlane.f32.xlu1 %v944_v29  ;;  %948 = vadd.xlane.f32.xlu0 %v947_v46  ;;  %v953_v55 = vsel %vm854_vm1, %v1957_v47, 0.0  ;;  %1618 = vpow2.f32 %v903_v18 }
 0x26c   : > { %1620 = vpow2.f32 %v901_v38 }
 0x26d   : > { %v1959_v49 = vpop.eup %1608 }
 0x26e   : > { %v950_v52 = vsel %vm854_vm1, %v1959_v49, 0.0 }
 0x26f   : > { %951 = vadd.xlane.f32.xlu1 %v950_v52  ;;  %954 = vadd.xlane.f32.xlu0 %v953_v55 }
 0x271   : > { %v1965_v56 = vpop.eup %1610 }
 0x272   : > { %v956_v57 = vsel %vm854_vm1, %v1965_v56, 0.0  ;;  %v1613_v41 = vpop.eup %1612 }
 0x273   : > { %957 = vadd.xlane.f32.xlu1 %v956_v57  ;;  %v1615_v50 = vpop.eup %1614 }
 0x274   : > { %v1617_v60 = vpop.eup %1616 }
 0x275   : > { %v1619_v2 = vpop.eup %1618 }
 0x276   : > { %v1621_v7 = vpop.eup %1620 }
 0x2ec   : > { %v940_v43 = vpop.xlane.xlu1 %939 }
 0x2ed   : > { %v960_v48 = vadd.f32 %v1613_v41, %v940_v43 }
 0x2ef   : > { %1622 = vrcp.f32 %v960_v48 }
 0x2f0   : > { %v937_v51 = vpop.xlane.xlu0 %936  ;;  %1624 = vpow2.f32 %v907_v42 }
 0x2f1   : > { %v959_v53 = vadd.f32 %v1615_v50, %v937_v51  ;;  %1626 = vpow2.f32 %v905_v45 }
 0x2f3   : > { %1628 = vrcp.f32 %v959_v53 }
 0x2f4   : > { %v943_v61 = vpop.xlane.xlu0 %942  ;;  %1630 = vpow2.f32 %v909_v54 }
 0x2f5   : > { %v961_v63 = vadd.f32 %v1617_v60, %v943_v61 }
 0x2f7   : > { %1632 = vrcp.f32 %v961_v63 }
 0x2f8   : > { %v946_v62 = vpop.xlane.xlu1 %945  ;;  %v949_v5 = vpop.xlane.xlu0 %948 }
 0x2f9   : > { %v1623_v9 = vpop.eup %1622  ;;  %v962_v25 = vadd.f32 %v1621_v7, %v946_v62  ;;  %v963_v28 = vadd.f32 %v1619_v2, %v949_v5 }
 0x2fa   : > { %v976_v30 = vmul.f32 %v1623_v9, %v1613_v41  ;;  %v1625_v31 = vpop.eup %1624  ;;  %v984_v55 = vmul.f32 %v1623_v9, %v1928_v23 }
 0x2fb   : > { %1634 = vrcp.f32 %v962_v25  ;;  %v1627_v32 = vpop.eup %1626 }
 0x2fc   : > { %1636 = vrcp.f32 %v963_v28  ;;  %v992_v35 = vmul.f32 %v1502_v1, %v976_v30  ;;  %v952_v34 = vpop.xlane.xlu1 %951  ;;  %v955_v36 = vpop.xlane.xlu0 %954 }
 0x2fd   : > { %v1629_v37 = vpop.eup %1628  ;;  %v964_v39 = vadd.f32 %v1627_v32, %v952_v34  ;;  %v965_v29 = vadd.f32 %v1625_v31, %v955_v36 }
 0x2fe   : > { %v975_v46 = vmul.f32 %v1629_v37, %v1615_v50  ;;  %v983_v52 = vmul.f32 %v1629_v37, %v1939_v33  ;;  %v1631_v57 = vpop.eup %1630 }
 0x2ff   : > { %1638 = vrcp.f32 %v964_v39 }
 0x300   : > { %1640 = vrcp.f32 %v965_v29  ;;  %v991_v58 = vmul.f32 %v975_v46, %v630_v3  ;;  %v958_v59 = vpop.xlane.xlu1 %957  ;;  %1536 = vmatprep.mubr.msk.f32.mxu0 %vm854_vm1, %v983_v52 }
 0x301   : > { %v1633_v0 = vpop.eup %1632  ;;  %v966_v22 = vadd.f32 %v1631_v57, %v958_v59  ;;  %1537 = vmatmul.mubr.msk.f32.vlgmr.msra.gmra.mrb[12].mxu0 %vm854_vm1, %v984_v55 }
 0x302   : > { %v977_v1 = vmul.f32 %v1633_v0, %v1617_v60  ;;  %v985_v24 = vmul.f32 %v1633_v0, %v1945_v26 }
 0x303   : > { %1642 = vrcp.f32 %v966_v22 }
 0x304   : > { %v993_v27 = vmul.f32 %v977_v1, %v1977_v6  ;;  %1539 = vmatprep.mubr.msk.f32.mxu0 %vm854_vm1, %v985_v24 }
 0x305   : > { %v1635_v23 = vpop.eup %1634 }
 0x306   : > { %v1637_v33 = vpop.eup %1636  ;;  %v978_v18 = vmul.f32 %v1635_v23, %v1621_v7  ;;  %v986_v3 = vmul.f32 %v1635_v23, %v1951_v44 }
 0x307   : > { %v979_v38 = vmul.f32 %v1637_v33, %v1619_v2  ;;  %v987_v41 = vmul.f32 %v1637_v33, %v1949_v40 }
 0x308   : > { %v994_v43 = vmul.f32 %v1975_v4, %v978_v18  ;;  %1540 = vmatmul.mubr.msk.f32.gmra.mrb[14].mxu0 %vm854_vm1, %v986_v3 }
 0x309   : > { %v1639_v42 = vpop.eup %1638  ;;  %v995_v26 = vmul.f32 %v979_v38, %v1981_v10  ;;  %1542 = vmatprep.mubr.msk.f32.mxu0 %vm854_vm1, %v987_v41 }
 0x30a   : > { %v1641_v6 = vpop.eup %1640  ;;  %v980_v48 = vmul.f32 %v1639_v42, %v1627_v32  ;;  %v988_v45 = vmul.f32 %v1639_v42, %v1959_v49 }
 0x30b   : > { %v981_v50 = vmul.f32 %v1641_v6, %v1625_v31  ;;  %v989_v51 = vmul.f32 %v1641_v6, %v1957_v47 }
 0x30c   : > { %v996_v44 = vmul.f32 %v1979_v8, %v980_v48  ;;  %1543 = vmatmul.mubr.msk.f32.gmra.mrb[16].mxu0 %vm854_vm1, %v988_v45 }
 0x30d   : > { %v1643_v40 = vpop.eup %1642  ;;  %v997_v4 = vmul.f32 %v981_v50, %v1985_v19  ;;  %1545 = vmatprep.mubr.msk.f32.mxu0 %vm854_vm1, %v989_v51 }
 0x30e   : > { %v982_v53 = vmul.f32 %v1643_v40, %v1631_v57  ;;  %v990_v10 = vmul.f32 %v1643_v40, %v1965_v56 }
 0x310   : > { %v998_v54 = vmul.f32 %v1983_v16, %v982_v53  ;;  %1546 = vmatmul.mubr.msk.f32.gmra.mrb[18].mxu0 %vm854_vm1, %v990_v10 }
 0x3d4   : > { %v1538_v49 = vpop.f32.mrb[12].mxu0 }
 0x3d5   : > { %v1129_v60 = vadd.f32 %v1538_v49, %v992_v35  ;;  %v1089_v61 = vpop.f32.mrb[13].mxu0 }
 0x3d6   : > { %v1128_v47 = vadd.f32 %v1089_v61, %v991_v58 }
 0x3d7   : > { %v1137_v8 = vadd.f32 %v1129_v60, %v1757_v13 }
 0x3d8   : > { %v1136_v63 = vadd.f32 %v1128_v47, %v1753_v11 }
 0x3d9   : > { %v1147_v2 = vsel %vm321_vm0, %v1137_v8, 0.0 }
 0x3da   : > { %1148 = vadd.xlane.f32.xlu1 %v1147_v2  ;;  %v1144_v19 = vsel %vm321_vm0, %v1136_v63, 0.0 }
 0x3db   : > { %1145 = vadd.xlane.f32.xlu0 %v1144_v19  ;;  %v1541_v7 = vpop.f32.mrb[14].mxu0 }
 0x3dc   : > { %v1131_v56 = vadd.f32 %v1541_v7, %v994_v43  ;;  %v1099_v62 = vpop.f32.mrb[15].mxu0 }
 0x3dd   : > { %v1130_v16 = vadd.f32 %v1099_v62, %v993_v27 }
 0x3de   : > { %v1139_v5 = vadd.f32 %v1131_v56, %v1781_v20 }
 0x3df   : > { %v1544_v9 = vpop.f32.mrb[16].mxu0  ;;  %v1138_v25 = vadd.f32 %v1130_v16, %v1765_v15 }
 0x3e0   : > { %v1133_v28 = vadd.f32 %v1544_v9, %v996_v44  ;;  %v1109_v30 = vpop.f32.mrb[17].mxu0  ;;  %v1153_v13 = vsel %vm321_vm0, %v1139_v5, 0.0 }
 0x3e1   : > { %v1132_v11 = vadd.f32 %v1109_v30, %v995_v26  ;;  %1154 = vadd.xlane.f32.xlu1 %v1153_v13  ;;  %v1150_v31 = vsel %vm321_vm0, %v1138_v25, 0.0 }
 0x3e2   : > { %1151 = vadd.xlane.f32.xlu0 %v1150_v31  ;;  %v1141_v32 = vadd.f32 %v1133_v28, %v1759_v14 }
 0x3e3   : > { %v1547_v35 = vpop.f32.mrb[18].mxu0  ;;  %v1140_v34 = vadd.f32 %v1132_v11, %v1755_v12 }
 0x3e4   : > { %v1135_v36 = vadd.f32 %v1547_v35, %v998_v54  ;;  %v1119_v37 = vpop.f32.mrb[19].mxu0  ;;  %v1159_v20 = vsel %vm321_vm0, %v1141_v32, 0.0 }
 0x3e5   : > { %v1134_v39 = vadd.f32 %v1119_v37, %v997_v4  ;;  %1160 = vadd.xlane.f32.xlu1 %v1159_v20  ;;  %v1156_v15 = vsel %vm321_vm0, %v1140_v34, 0.0 }
 0x3e6   : > { %1157 = vadd.xlane.f32.xlu0 %v1156_v15  ;;  %v1143_v29 = vadd.f32 %v1135_v36, %v1783_v21 }
 0x3e7   : > { %v1142_v46 = vadd.f32 %v1134_v39, %v1767_v17  ;;  %v1390_v39 = vld [vmem:[%s2129_s6] ss:$0 sm:$0xff] }
 0x3e8   : > { %v1165_v52 = vsel %vm321_vm0, %v1143_v29, 0.0 }
 0x3e9   : > { %1166 = vadd.xlane.f32.xlu1 %v1165_v52  ;;  %v1162_v14 = vsel %vm321_vm0, %v1142_v46, 0.0 }
 0x3ea   : > { %1163 = vadd.xlane.f32.xlu0 %v1162_v14 }
 0x467   : > { %v1149_v12 = vpop.xlane.xlu1 %1148 }
 0x468   : > { %v1170_v55 = vmul.f32 0.03125, %v1149_v12  ;;  %v1146_v57 = vpop.xlane.xlu0 %1145 }
 0x469   : > { %v1169_v58 = vmul.f32 0.03125, %v1146_v57 }
 0x46a   : > { %v2043_v59 = vsub.f32 %v1137_v8, %v1170_v55  ;;  %v1391_v55 = vld [vmem:[%s2130_s7] ss:$0 sm:$0xff] }
 0x46b   : > { %v2045_v0 = vsub.f32 %v1136_v63, %v1169_v58 }
 0x46c   : > { %v1186_v22 = vmul.f32 %v2043_v59, %v2043_v59 }
 0x46d   : > { %v1185_v17 = vmul.f32 %v2045_v0, %v2045_v0 }
 0x46e   : > { %v1155_v21 = vpop.xlane.xlu1 %1154  ;;  %v1196_v1 = vsel %vm321_vm0, %v1186_v22, 0.0 }
 0x46f   : > { %v1172_v24 = vmul.f32 0.03125, %v1155_v21  ;;  %v1152_v27 = vpop.xlane.xlu0 %1151  ;;  %1197 = vadd.xlane.f32.xlu1 %v1196_v1  ;;  %v1193_v23 = vsel %vm321_vm0, %v1185_v17, 0.0 }
 0x470   : > { %v1171_v33 = vmul.f32 0.03125, %v1152_v27  ;;  %1194 = vadd.xlane.f32.xlu0 %v1193_v23 }
 0x471   : > { %v2053_v18 = vsub.f32 %v1139_v5, %v1172_v24 }
 0x472   : > { %v2055_v3 = vsub.f32 %v1138_v25, %v1171_v33  ;;  %v1161_v38 = vpop.xlane.xlu1 %1160 }
 0x473   : > { %v1174_v41 = vmul.f32 0.03125, %v1161_v38  ;;  %v1158_v43 = vpop.xlane.xlu0 %1157  ;;  %v1188_v42 = vmul.f32 %v2053_v18, %v2053_v18 }
 0x474   : > { %v1173_v26 = vmul.f32 0.03125, %v1158_v43  ;;  %v1187_v6 = vmul.f32 %v2055_v3, %v2055_v3 }
 0x475   : > { %v2061_v48 = vsub.f32 %v1141_v32, %v1174_v41  ;;  %v1202_v45 = vsel %vm321_vm0, %v1188_v42, 0.0 }
 0x476   : > { %v2064_v50 = vsub.f32 %v1140_v34, %v1173_v26  ;;  %1203 = vadd.xlane.f32.xlu1 %v1202_v45  ;;  %v1167_v51 = vpop.xlane.xlu1 %1166  ;;  %v1199_v44 = vsel %vm321_vm0, %v1187_v6, 0.0 }
 0x477   : > { %v1176_v40 = vmul.f32 0.03125, %v1167_v51  ;;  %1200 = vadd.xlane.f32.xlu0 %v1199_v44  ;;  %v1164_v4 = vpop.xlane.xlu0 %1163  ;;  %v1190_v53 = vmul.f32 %v2061_v48, %v2061_v48 }
 0x478   : > { %v1175_v10 = vmul.f32 0.03125, %v1164_v4  ;;  %v1189_v54 = vmul.f32 %v2064_v50, %v2064_v50 }
 0x479   : > { %v2071_v49 = vsub.f32 %v1143_v29, %v1176_v40  ;;  %v1208_v60 = vsel %vm321_vm0, %v1190_v53, 0.0 }
 0x47a   : > { %v2074_v61 = vsub.f32 %v1142_v46, %v1175_v10  ;;  %1209 = vadd.xlane.f32.xlu1 %v1208_v60  ;;  %v1205_v47 = vsel %vm321_vm0, %v1189_v54, 0.0 }
 0x47b   : > { %1206 = vadd.xlane.f32.xlu0 %v1205_v47  ;;  %v1192_v8 = vmul.f32 %v2071_v49, %v2071_v49 }
 0x47c   : > { %v1191_v63 = vmul.f32 %v2074_v61, %v2074_v61 }
 0x47d   : > { %v1214_v2 = vsel %vm321_vm0, %v1192_v8, 0.0 }
 0x47e   : > { %1215 = vadd.xlane.f32.xlu1 %v1214_v2  ;;  %v1211_v19 = vsel %vm321_vm0, %v1191_v63, 0.0 }
 0x47f   : > { %1212 = vadd.xlane.f32.xlu0 %v1211_v19 }
 0x4fc   : > { %v1198_v7 = vpop.xlane.xlu1 %1197 }
 0x4fd   : > { %v1218_v56 = vmul.f32 0.03125, %v1198_v7  ;;  %v1195_v62 = vpop.xlane.xlu0 %1194 }
 0x4fe   : > { %v1217_v16 = vmul.f32 0.03125, %v1195_v62 }
 0x4ff   : > { %v1226_v5 = vadd.f32 1e-06, %v1218_v56 }
 0x500   : > { %v1225_v9 = vadd.f32 1e-06, %v1217_v16 }
 0x501   : > { %1644 = vrsqrt.f32 %v1226_v5 }
 0x502   : > { %1646 = vrsqrt.f32 %v1225_v9 }
 0x503   : > { %v1204_v25 = vpop.xlane.xlu1 %1203 }
 0x504   : > { %v1220_v28 = vmul.f32 0.03125, %v1204_v25  ;;  %v1201_v30 = vpop.xlane.xlu0 %1200 }
 0x505   : > { %v1219_v13 = vmul.f32 0.03125, %v1201_v30 }
 0x506   : > { %v1228_v11 = vadd.f32 1e-06, %v1220_v28 }
 0x507   : > { %v1227_v31 = vadd.f32 1e-06, %v1219_v13  ;;  %v1210_v32 = vpop.xlane.xlu1 %1209 }
 0x508   : > { %1648 = vrsqrt.f32 %v1228_v11  ;;  %v1222_v35 = vmul.f32 0.03125, %v1210_v32  ;;  %v1207_v34 = vpop.xlane.xlu0 %1206 }
 0x509   : > { %1650 = vrsqrt.f32 %v1227_v31  ;;  %v1221_v36 = vmul.f32 0.03125, %v1207_v34 }
 0x50a   : > { %v1230_v37 = vadd.f32 1e-06, %v1222_v35 }
 0x50b   : > { %v1645_v20 = vpop.eup %1644  ;;  %v1229_v15 = vadd.f32 1e-06, %v1221_v36  ;;  %v1216_v29 = vpop.xlane.xlu1 %1215 }
 0x50c   : > { %v1647_v46 = vpop.eup %1646  ;;  %v1242_v52 = vmul.f32 %v1645_v20, %v2043_v59  ;;  %1652 = vrsqrt.f32 %v1230_v37  ;;  %v1224_v14 = vmul.f32 0.03125, %v1216_v29  ;;  %v1213_v12 = vpop.xlane.xlu0 %1212 }
 0x50d   : > { %v1241_v57 = vmul.f32 %v1647_v46, %v2045_v0  ;;  %1654 = vrsqrt.f32 %v1229_v15  ;;  %v1223_v58 = vmul.f32 0.03125, %v1213_v12 }
 0x50e   : > { %v1256_v22 = vmul.f32 %v1390_v39, %v1242_v52  ;;  %v1232_v17 = vadd.f32 1e-06, %v1224_v14 }
 0x50f   : > { %v1255_v59 = vmul.f32 %v1390_v39, %v1241_v57  ;;  %v1231_v21 = vadd.f32 1e-06, %v1223_v58 }
 0x510   : > { %v1270_v1 = vadd.f32 %v1391_v55, %v1256_v22  ;;  %1656 = vrsqrt.f32 %v1232_v17 }
 0x511   : > { %v1269_v24 = vadd.f32 %v1391_v55, %v1255_v59  ;;  %1658 = vrsqrt.f32 %v1231_v21 }
 0x512   : > { %v1649_v0 = vpop.eup %1648  ;;  %1278 = vst.msk [vmem:[%s2096_s15 + $0x8] sm:$0xff] %vm321_vm0, %v1270_v1 }
 0x513   : > { %v1651_v27 = vpop.eup %1650  ;;  %1277 = vst.msk [vmem:[%s2096_s15] sm:$0xff] %vm321_vm0, %v1269_v24  ;;  %v1244_v23 = vmul.f32 %v1649_v0, %v2053_v18 }
 0x514   : > { %v1243_v33 = vmul.f32 %v1651_v27, %v2055_v3 }
 0x515   : > { %v1258_v38 = vmul.f32 %v1390_v39, %v1244_v23 }
 0x516   : > { %v1653_v41 = vpop.eup %1652  ;;  %v1257_v43 = vmul.f32 %v1390_v39, %v1243_v33 }
 0x517   : > { %v1655_v42 = vpop.eup %1654  ;;  %v1272_v26 = vadd.f32 %v1391_v55, %v1258_v38  ;;  %v1246_v6 = vmul.f32 %v1653_v41, %v2061_v48 }
 0x518   : > { %v1271_v45 = vadd.f32 %v1391_v55, %v1257_v43  ;;  %v1245_v51 = vmul.f32 %v1655_v42, %v2064_v50 }
 0x519   : > { %1280 = vst.msk [vmem:[%s2096_s15 + $0x18] sm:$0xff] %vm321_vm0, %v1272_v26  ;;  %v1260_v44 = vmul.f32 %v1390_v39, %v1246_v6 }
 0x51a   : > { %v1657_v18 = vpop.eup %1656  ;;  %1279 = vst.msk [vmem:[%s2096_s15 + $0x10] sm:$0xff] %vm321_vm0, %v1271_v45  ;;  %v1259_v3 = vmul.f32 %v1390_v39, %v1245_v51 }
 0x51b   : > { %v1659_v40 = vpop.eup %1658  ;;  %v1274_v4 = vadd.f32 %v1391_v55, %v1260_v44  ;;  %v1248_v53 = vmul.f32 %v1657_v18, %v2071_v49 }
 0x51c   : > { %v1273_v10 = vadd.f32 %v1391_v55, %v1259_v3  ;;  %v1247_v54 = vmul.f32 %v1659_v40, %v2074_v61 }
 0x51d   : > { %1282 = vst.msk [vmem:[%s2096_s15 + $0x28] sm:$0xff] %vm321_vm0, %v1274_v4  ;;  %v1262_v48 = vmul.f32 %v1390_v39, %v1248_v53 }
 0x51e   : > { %1281 = vst.msk [vmem:[%s2096_s15 + $0x20] sm:$0xff] %vm321_vm0, %v1273_v10  ;;  %v1261_v50 = vmul.f32 %v1390_v39, %v1247_v54 }
 0x51f   : > { %v1276_v60 = vadd.f32 %v1391_v55, %v1262_v48 }
 0x520   : > { %v1275_v47 = vadd.f32 %v1391_v55, %v1261_v50 }
 0x521   : > { %1284 = vst.msk [vmem:[%s2096_s15 + $0x38] sm:$0xff] %vm321_vm0, %v1276_v60 }
 0x522   : > { %1283 = vst.msk [vmem:[%s2096_s15 + $0x30] sm:$0xff] %vm321_vm0, %v1275_v47 }
 0x523 PF: > { %s18_s27 = sadd.s32 1, %s1666_s27  }
 0x524   : > { %p15_p4 = scmp.ge.s32.totalorder %s18_s27, 4  }
 0x526   :  { %17 = sbr.rel (!%p15_p4) target bundleno = 1 (0x1), region = 82 }

</bundles_post_ra>
